<compile_context>
chip_gen: v5e
topology: v5e:2x2
jax: 0.10.0
libtpu: 0.0.40
codegen_flags: <defaults>
</compile_context>

<pallas_src>
import jax
import jax.numpy as jnp
from jax.experimental import pallas as pl
from jax.experimental.pallas import tpu as pltpu


def _round_up(x: int, m: int) -> int:
    return ((x + m - 1) // m) * m


def _silu(x):
    return x * jax.nn.sigmoid(x)


def block_kernel(x_ref, p_ref, w1_ref, w2_ref, o_ref):
    """One (tn, Hp) tile of rows: normalize, Linear1+SiLU, Linear2, skip, SiLU."""
    x = x_ref[...].astype(jnp.float32)              # bf16 -> f32, (tn, Hp)
    p = p_ref[...]                                  # (8, Hp) packed f32 params
    mean = p[0:1, :]
    inv_std = p[1:2, :]
    b1 = p[2:3, :]
    b2 = p[3:4, :]

    # BatchNorm1d normalization (gamma/beta already folded into W1/b1) - f32 VPU.
    xn = (x - mean) * inv_std

    # Linear 1 (bf16 MXU, f32 accumulate) + SiLU (f32, exp goes to EUP).
    h1 = jnp.dot(xn.astype(jnp.bfloat16), w1_ref[...],
                 preferred_element_type=jnp.float32) + b1
    a = _silu(h1)

    # Linear 2 (bf16 MXU, f32 accumulate).
    h2 = jnp.dot(a.astype(jnp.bfloat16), w2_ref[...],
                 preferred_element_type=jnp.float32) + b2

    # Skip connection + final SiLU, all f32.
    y = x + h2
    o_ref[...] = _silu(y).astype(o_ref.dtype)


def _choose_row_tiling(n: int, hp: int, out_itemsize: int):
    """Pick a row tile that (a) keeps tiles in VMEM, (b) wastes <~1% rows."""
    n_pad8 = _round_up(max(n, 1), 8)
    # Cap so double-buffered x(bf16) + out tiles stay within ~8 MiB.
    bytes_per_row = hp * (2 + out_itemsize) * 2
    cap = max(8, ((8 << 20) // bytes_per_row) // 8 * 8)
    max_tn = 2048 if hp <= 128 else 1024
    max_tn = min(max_tn, cap)

    g = pl.cdiv(n_pad8, max_tn)
    if g == 1 and n_pad8 >= 512:
        g = 2                         # give megacore at least two row tiles
    tn = min(_round_up(pl.cdiv(n_pad8, g), 8), n_pad8)
    g = pl.cdiv(n_pad8, tn)
    return tn, g, g * tn


def block_forward(x, gamma, beta, w1, b1, w2, b2, *, eps=1e-5):
    n, h = x.shape
    hp = _round_up(h, 128)                    # lane-dense feature dim
    out_itemsize = jnp.dtype(x.dtype).itemsize
    tn, grid_n, n_pad = _choose_row_tiling(n, hp, out_itemsize)

    xf = x.astype(jnp.float32)

    # Full-batch BN statistics (biased variance, training mode) in ONE pass
    # over x: E[x] and E[x^2] fuse into a single read, var = E[x^2] - E[x]^2.
    mean = jnp.mean(xf, axis=0)
    mean_sq = jnp.mean(jnp.square(xf), axis=0)
    var = jnp.maximum(mean_sq - jnp.square(mean), 0.0)
    inv_std = jax.lax.rsqrt(var + eps)

    # Fold the BN affine into Linear1:  (xn*g + b) @ W1 + b1
    #   = xn @ (diag(g) @ W1) + (b @ W1 + b1)
    w1f = w1.astype(jnp.float32)
    w1_eff = gamma.astype(jnp.float32)[:, None] * w1f
    b1_eff = beta.astype(jnp.float32) @ w1f + b1.astype(jnp.float32)

    # Pack per-feature vectors into one (8, Hp) f32 array (single small DMA).
    def pad1(v):
        return jnp.pad(v.astype(jnp.float32), (0, hp - h))

    params = jnp.stack([pad1(mean), pad1(inv_std), pad1(b1_eff), pad1(b2)])
    params = jnp.pad(params, ((0, 4), (0, 0)))          # -> (8, hp)

    # Pad + downcast in one shot.  Padded lanes stay exactly zero through the
    # whole pipeline (inv_std pad = 0, weight pads = 0); padded rows (< 8) are
    # discarded at the end.  bf16 halves HBM bytes on the x / weight path.
    x_p = jnp.pad(x.astype(jnp.bfloat16), ((0, n_pad - n), (0, hp - h)))
    w1_p = jnp.pad(w1_eff, ((0, hp - h), (0, hp - h))).astype(jnp.bfloat16)
    w2_p = jnp.pad(w2.astype(jnp.float32),
                   ((0, hp - h), (0, hp - h))).astype(jnp.bfloat16)

    # VMEM budget: actual footprint (double-buffered) + headroom, capped well
    # below physical VMEM (v7x TC has only 64 MiB).
    need = (2 * tn * hp * 2                 # x tiles (bf16, double-buffered)
            + 2 * tn * hp * out_itemsize    # out tiles (double-buffered)
            + 2 * 2 * hp * hp * 2           # W1 + W2 (bf16, double-buffered)
            + 2 * 8 * hp * 4)               # packed params
    vmem_limit = max(2 * need, 16 << 20)
    vmem_cap = 128 << 20
    try:
        vmem_cap = int(getattr(pltpu.get_tpu_info(), "vmem_capacity_bytes",
                               vmem_cap))
    except Exception:
        pass
    vmem_limit = min(vmem_limit, (3 * vmem_cap) // 4)   # headroom on v7x
    vmem_limit = max(vmem_limit, need + (2 << 20))

    out = pl.pallas_call(
        block_kernel,
        out_shape=jax.ShapeDtypeStruct((n_pad, hp), x.dtype),
        grid_spec=pltpu.PrefetchScalarGridSpec(
            num_scalar_prefetch=0,
            grid=(grid_n,),
            in_specs=[
                pl.BlockSpec((tn, hp), lambda i: (i, 0)),   # x rows (bf16)
                pl.BlockSpec((8, hp), lambda i: (0, 0)),    # packed params
                pl.BlockSpec((hp, hp), lambda i: (0, 0)),   # W1 (BN folded)
                pl.BlockSpec((hp, hp), lambda i: (0, 0)),   # W2
            ],
            out_specs=pl.BlockSpec((tn, hp), lambda i: (i, 0)),
        ),
        compiler_params=pltpu.CompilerParams(
            dimension_semantics=("parallel",),     # row tiles are independent
            vmem_limit_bytes=int(vmem_limit),
        ),
    )(x_p, params, w1_p, w2_p)

    return out[:n, :h]


block_forward_jit = jax.jit(block_forward)


def reference_forward(x, gamma, beta, w1, b1, w2, b2, *, eps=1e-5):
    xf = x.astype(jnp.float32)
    mean = jnp.mean(xf, axis=0, keepdims=True)
    var = jnp.mean((xf - mean) ** 2, axis=0, keepdims=True)
    xn = (xf - mean) / jnp.sqrt(var + eps) * gamma + beta
    h1 = xn @ w1 + b1
    a = h1 * jax.nn.sigmoid(h1)
    h2 = a @ w2 + b2
    y = xf + h2
    return (y * jax.nn.sigmoid(y)).astype(x.dtype)


def _make_inputs(key, n, h):
    kx, kw1, kb1, kw2, kb2 = jax.random.split(key, 5)
    x = jax.random.normal(kx, (n, h), dtype=jnp.float32)
    gamma = jnp.ones((h,), dtype=jnp.float32)     # BN affine init
    beta = jnp.zeros((h,), dtype=jnp.float32)
    scale = 1.0 / jnp.sqrt(jnp.float32(h))
    w1 = jax.random.uniform(kw1, (h, h), jnp.float32, -scale, scale)
    b1 = jax.random.uniform(kb1, (h,), jnp.float32, -scale, scale)
    w2 = jax.random.uniform(kw2, (h, h), jnp.float32, -scale, scale)
    b2 = jax.random.uniform(kb2, (h,), jnp.float32, -scale, scale)
    return x, gamma, beta, w1, b1, w2, b2


def _check(out, ref, tag):
    assert out.shape == ref.shape, tag
    err = jnp.abs(out.astype(jnp.float32) - ref.astype(jnp.float32))
    # bf16 matmul / activation path -> looser absolute tolerance than f32.
    assert jnp.allclose(out, ref, atol=5e-2, rtol=5e-2), (
        f"mismatch {tag}: max_err={float(err.max())}")
    assert float(err.mean()) < 5e-3, f"mean error too large {tag}"


if __name__ == "__main__":
    key = jax.random.PRNGKey(0)
    k1, k2 = jax.random.split(key)

    # Small case (matches module defaults: batch=8, n_hidden_units=32).
    args = _make_inputs(k1, 8, 32)
    out = jax.block_until_ready(block_forward_jit(*args))
    _check(out, reference_forward(*args), "(8, 32)")

    # Larger / ragged batch: exercises adaptive row tiling + 2-step grid.
    args = _make_inputs(k2, 1037, 32)
    out = jax.block_until_ready(block_forward_jit(*args))
    _check(out, reference_forward(*args), "(1037, 32)")

    print("KERNEL_OK")
</pallas_src>

<mosaic_0001>
module attributes {stable_mosaic.version = 11 : i64} {
  func.func @block_kernel(%arg0: i32, %arg1: memref<8x128xbf16, #tpu.memory_space<vmem>>, %arg2: memref<8x128xf32, #tpu.memory_space<vmem>>, %arg3: memref<128x128xbf16, #tpu.memory_space<vmem>>, %arg4: memref<128x128xbf16, #tpu.memory_space<vmem>>, %arg5: memref<8x128xf32, #tpu.memory_space<vmem>>) attributes {dimension_semantics = [#tpu.dimension_semantics<parallel>], iteration_bounds = array<i64: 1>, scalar_prefetch = 0 : i64, scratch_operands = 0 : i64, tpu.core_type = #tpu.core_type<tc>, window_params = [{transform_indices = @transform_0, window_bounds = array<i64: 8, 128>}, {pipeline_mode = #tpu.pipeline_mode<synchronous>, transform_indices = @transform_1, window_bounds = array<i64: 8, 128>}, {pipeline_mode = #tpu.pipeline_mode<synchronous>, transform_indices = @transform_2, window_bounds = array<i64: 128, 128>}, {pipeline_mode = #tpu.pipeline_mode<synchronous>, transform_indices = @transform_3, window_bounds = array<i64: 128, 128>}, {transform_indices = @transform_4, window_bounds = array<i64: 8, 128>}]} {
    %c0 = arith.constant 0 : index
    %c0_0 = arith.constant 0 : index
    %0 = vector.load %arg1[%c0, %c0_0] : memref<8x128xbf16, #tpu.memory_space<vmem>>, vector<8x128xbf16>
    %1 = arith.extf %0 : vector<8x128xbf16> to vector<8x128xf32>
    %c0_1 = arith.constant 0 : index
    %c0_2 = arith.constant 0 : index
    %2 = vector.load %arg2[%c0_1, %c0_2] : memref<8x128xf32, #tpu.memory_space<vmem>>, vector<8x128xf32>
    %3 = vector.extract_strided_slice %2 {offsets = [0, 0], sizes = [1, 128], strides = [1, 1]} : vector<8x128xf32> to vector<1x128xf32>
    %4 = vector.extract_strided_slice %2 {offsets = [1, 0], sizes = [1, 128], strides = [1, 1]} : vector<8x128xf32> to vector<1x128xf32>
    %5 = vector.extract_strided_slice %2 {offsets = [2, 0], sizes = [1, 128], strides = [1, 1]} : vector<8x128xf32> to vector<1x128xf32>
    %6 = vector.extract_strided_slice %2 {offsets = [3, 0], sizes = [1, 128], strides = [1, 1]} : vector<8x128xf32> to vector<1x128xf32>
    %7 = vector.broadcast %3 : vector<1x128xf32> to vector<8x128xf32>
    %8 = arith.subf %1, %7 : vector<8x128xf32>
    %9 = vector.broadcast %4 : vector<1x128xf32> to vector<8x128xf32>
    %10 = arith.mulf %8, %9 : vector<8x128xf32>
    %11 = arith.truncf %10 : vector<8x128xf32> to vector<8x128xbf16>
    %c0_3 = arith.constant 0 : index
    %c0_4 = arith.constant 0 : index
    %12 = vector.load %arg3[%c0_3, %c0_4] : memref<128x128xbf16, #tpu.memory_space<vmem>>, vector<128x128xbf16>
    %cst = arith.constant dense<0.000000e+00> : vector<8x128xf32>
    %13 = tpu.matmul %11, %12, %cst {dimension_numbers = #tpu.dot_dimension_numbers<[1], [0], [0], [1], [0, 0, 1, 1], [], []>} : vector<8x128xbf16>, vector<128x128xbf16>, vector<8x128xf32> -> vector<8x128xf32>
    %14 = vector.broadcast %5 : vector<1x128xf32> to vector<8x128xf32>
    %15 = arith.addf %13, %14 : vector<8x128xf32>
    %16 = arith.negf %15 : vector<8x128xf32>
    %17 = math.exp %16 : vector<8x128xf32>
    %cst_5 = arith.constant 1.000000e+00 : f32
    %18 = vector.broadcast %cst_5 : f32 to vector<8x128xf32>
    %19 = arith.addf %18, %17 : vector<8x128xf32>
    %20 = arith.divf %18, %19 : vector<8x128xf32>
    %21 = arith.mulf %15, %20 : vector<8x128xf32>
    %22 = arith.truncf %21 : vector<8x128xf32> to vector<8x128xbf16>
    %c0_6 = arith.constant 0 : index
    %c0_7 = arith.constant 0 : index
    %23 = vector.load %arg4[%c0_6, %c0_7] : memref<128x128xbf16, #tpu.memory_space<vmem>>, vector<128x128xbf16>
    %cst_8 = arith.constant dense<0.000000e+00> : vector<8x128xf32>
    %24 = tpu.matmul %22, %23, %cst_8 {dimension_numbers = #tpu.dot_dimension_numbers<[1], [0], [0], [1], [0, 0, 1, 1], [], []>} : vector<8x128xbf16>, vector<128x128xbf16>, vector<8x128xf32> -> vector<8x128xf32>
    %25 = vector.broadcast %6 : vector<1x128xf32> to vector<8x128xf32>
    %26 = arith.addf %24, %25 : vector<8x128xf32>
    %27 = arith.addf %1, %26 : vector<8x128xf32>
    %28 = arith.negf %27 : vector<8x128xf32>
    %29 = math.exp %28 : vector<8x128xf32>
    %cst_9 = arith.constant 1.000000e+00 : f32
    %30 = vector.broadcast %cst_9 : f32 to vector<8x128xf32>
    %31 = arith.addf %30, %29 : vector<8x128xf32>
    %32 = arith.divf %30, %31 : vector<8x128xf32>
    %33 = arith.mulf %27, %32 : vector<8x128xf32>
    %c0_10 = arith.constant 0 : index
    %c0_11 = arith.constant 0 : index
    %34 = vector.load %arg5[%c0_10, %c0_11] : memref<8x128xf32, #tpu.memory_space<vmem>>, vector<8x128xf32>
    tpu.vector_store %arg5[%c0_10, %c0_11], %33 {strides = array<i32>} : memref<8x128xf32, #tpu.memory_space<vmem>>, vector<8x128xf32>,
    return
  }
  func.func @transform_0(%arg0: i32) -> (i32, i32) {
    %c0_i32 = arith.constant 0 : i32
    %c0_i32_0 = arith.constant 0 : i32
    return %arg0, %c0_i32 : i32, i32
  }
  func.func @transform_1(%arg0: i32) -> (i32, i32) {
    %c0_i32 = arith.constant 0 : i32
    %c0_i32_0 = arith.constant 0 : i32
    %c0_i32_1 = arith.constant 0 : i32
    return %c0_i32, %c0_i32_0 : i32, i32
  }
  func.func @transform_2(%arg0: i32) -> (i32, i32) {
    %c0_i32 = arith.constant 0 : i32
    %c0_i32_0 = arith.constant 0 : i32
    %c0_i32_1 = arith.constant 0 : i32
    return %c0_i32, %c0_i32_0 : i32, i32
  }
  func.func @transform_3(%arg0: i32) -> (i32, i32) {
    %c0_i32 = arith.constant 0 : i32
    %c0_i32_0 = arith.constant 0 : i32
    %c0_i32_1 = arith.constant 0 : i32
    return %c0_i32, %c0_i32_0 : i32, i32
  }
  func.func @transform_4(%arg0: i32) -> (i32, i32) {
    %c0_i32 = arith.constant 0 : i32
    %c0_i32_0 = arith.constant 0 : i32
    return %arg0, %c0_i32 : i32, i32
  }
}

</mosaic_0001>

<bundles_post_ra>
// kernel: block_forward.1
= control target key start
LH: loop header
LB: loop body
LE: loop exit
PB: predicated region body
PF: predicated region fallthrough
CT: control target
= control target key end

     0   :  { %s441_s0 = inlined_call_operand.vmem [shape: bf16[8,128], index: 0, kind: input, shape index: {}]   ;;  %s442_s1 = inlined_call_operand.vmem [shape: f32[8,128], index: 1, kind: input, shape index: {}]   ;;  %s443_s2 = inlined_call_operand.vmem [shape: bf16[128,128], index: 2, kind: input, shape index: {}]   ;;  %s444_s3 = inlined_call_operand.vmem [shape: bf16[128,128], index: 3, kind: input, shape index: {}]   ;;  %s445_s4 = inlined_call_operand.hbm [shape: f32[8,128], index: 4, kind: output, shape index: {}]  }
   0x1   :  { %v314_v0 = vld [vmem:[%s443_s2 + $0x38] sm:$0xff]  ;;  %v313_v1 = vld [vmem:[%s443_s2 + $0x30] sm:$0xff] }
   0x2   :  { %91 = vmatpush.bf16.msra.mxu0 %v314_v0 }
   0x3   :  { %9 = vsyncpa [#allocation3], 0  ;;  %v312_v2 = vld [vmem:[%s443_s2 + $0x28] sm:$0xff]  ;;  %v311_v3 = vld [vmem:[%s443_s2 + $0x20] sm:$0xff]  ;;  %s232_s25 = sshll.u32 %s445_s4, 4  ;;  %s233_s25 = int_to_ptr.hbm [resolvable:$true] %s232_s25 }
   0x4   :  { %v310_v4 = vld [vmem:[%s443_s2 + $0x18] sm:$0xff]  ;;  %v18_v5 = vld [vmem:[%s441_s0] sm:$0xf]  ;;  %v309_v9 = vld [vmem:[%s443_s2 + $0x10] sm:$0xff] }
   0x5   :  { %v20_v6 = vld [vmem:[%s442_s1] sm:$0xff]  ;;  %v19_v7 = vunpack.c.l.bf16 %v18_v5  ;;  %v308_v12 = vld [vmem:[%s443_s2 + $0x8] sm:$0xff]  ;;  %v322_v16 = vld [vmem:[%s444_s3 + $0x38] sm:$0xff] }
   0x6   :  { %92 = vmatpush.bf16.msra.mxu0 %v313_v1  ;;  %v21_v8 = vperm.slane %v20_v6, 0  ;;  %v23_v11 = vperm.slane %v20_v6, 1  ;;  %v307_v14 = vld [vmem:[%s443_s2] sm:$0xff]  ;;  %190 = vmatpush.bf16.msra.mxu1 %v322_v16  ;;  %v321_v17 = vld [vmem:[%s444_s3 + $0x30] sm:$0xff]  ;;  %v320_v18 = vld [vmem:[%s444_s3 + $0x28] sm:$0xff]  ;;  %v42_v24 = vperm.slane %v20_v6, 2 }
   0x7   :  { %v319_v19 = vld [vmem:[%s444_s3 + $0x20] sm:$0xff]  ;;  %v318_v20 = vld [vmem:[%s444_s3 + $0x18] sm:$0xff]  ;;  %v317_v21 = vld [vmem:[%s444_s3 + $0x10] sm:$0xff]  ;;  %v141_v43 = vperm.slane %v20_v6, 3 }
   0x8   :  { %v22_v10 = vsub.f32 %v19_v7, %v21_v8  ;;  %v316_v22 = vld [vmem:[%s444_s3 + $0x8] sm:$0xff]  ;;  %v315_v23 = vld [vmem:[%s444_s3] sm:$0xff]  ;;  %s358_s3 = smov [#allocation2]  }
   0x9   :  { %s230_s22 = sshll.u32 %s358_s3, 4  ;;  %s231_s22 = int_to_ptr.vmem [resolvable:$true] %s230_s22 }
   0xa   :  { %93 = vmatpush.bf16.msra.mxu0 %v312_v2  ;;  %v24_v13 = vmul.f32 %v23_v11, %v22_v10  ;;  %191 = vmatpush.bf16.msra.mxu1 %v321_v17 }
   0xc   :  { %v25_v15 = vpack.c.bf16 %v24_v13, %v24_v13 }
   0xe   :  { %94 = vmatpush.bf16.msra.mxu0 %v311_v3  ;;  %192 = vmatpush.bf16.msra.mxu1 %v320_v18 }
  0x12   :  { %95 = vmatpush.bf16.msra.mxu0 %v310_v4  ;;  %193 = vmatpush.bf16.msra.mxu1 %v319_v19 }
  0x16   :  { %96 = vmatpush.bf16.msra.mxu0 %v309_v9  ;;  %194 = vmatpush.bf16.msra.mxu1 %v318_v20 }
  0x1a   :  { %97 = vmatpush.bf16.msra.mxu0 %v308_v12  ;;  %195 = vmatpush.bf16.msra.mxu1 %v317_v21 }
  0x1e   :  { %98 = vmatpush.bf16.msra.mxu0 %v307_v14  ;;  %196 = vmatpush.bf16.msra.mxu1 %v316_v22 }
  0x21   :  { %99 = vmatmul.bf16.vlgmr.msra.gmra.mxu0 %v25_v15 }
  0x22   :  { %197 = vmatpush.bf16.msra.mxu1 %v315_v23 }
  0x9e   :  { %v100_v25 = vpop.f32.mrf.mxu0 }
  0x9f   :  { %v101_v26 = vadd.f32 %v100_v25, %v42_v24 }
  0xa1   :  { %v273_v27 = vmul.f32 -1.442695, %v101_v26 }
  0xa3   :  { %324 = vpow2.f32 %v273_v27 }
  0xa6   :  { %v102_v28 = vpop.f32.mrf.mxu0 }
  0xa9   :  { %v325_v29 = vpop.eup %324 }
  0xaa   :  { %v107_v30 = vadd.f32 1.0, %v325_v29 }
  0xac   :  { %326 = vrcp.f32 %v107_v30  ;;  %v119_v34 = vand.u32 2147483648, %v107_v30  ;;  %v117_v36 = vand.u32 2147483647, %v107_v30  ;;  %vm113_vm1 = vweird.f32 %v107_v30 }
  0xae   :  { %v120_v38 = vor.u32 1.1754944e-38, %v119_v34  ;;  %vm118_vm3 = vcmp.eq.f32.partialorder %v117_v36, 8.507059e+37 }
  0xb2   :  { %v327_v31 = vpop.eup %326 }
  0xb3   :  { %v109_v32 = vmul.f32 %v327_v31, %v107_v30  ;;  %vm114_vm0 = vweird.f32 %v327_v31 }
  0xb4   :  { %vm115_vm2 = vmor %vm113_vm1, %vm114_vm0 }
  0xb5   :  { %v110_v33 = vsub.f32 1.0, %v109_v32 }
  0xb7   :  { %v111_v35 = vmul.f32 %v327_v31, %v110_v33 }
  0xb9   :  { %v112_v37 = vadd.f32 %v327_v31, %v111_v35 }
  0xbb   :  { %v116_v39 = vsel %vm115_vm2, %v327_v31, %v112_v37 }
  0xbc   :  { %v121_v40 = vsel %vm118_vm3, %v120_v38, %v116_v39 }
  0xbd   :  { %v123_v41 = vmul.f32 %v121_v40, %v101_v26 }
  0xbf   :  { %v124_v42 = vpack.c.bf16 %v123_v41, %v123_v41 }
  0xc1   :  { %198 = vmatmul.bf16.vlgmr.msra.gmra.mxu1 %v124_v42 }
 0x13e   :  { %v199_v44 = vpop.f32.mrf.mxu1 }
 0x13f   :  { %v200_v45 = vadd.f32 %v199_v44, %v141_v43 }
 0x141   :  { %v203_v46 = vadd.f32 %v200_v45, %v19_v7 }
 0x143   :  { %v306_v47 = vmul.f32 -1.442695, %v203_v46 }
 0x145   :  { %328 = vpow2.f32 %v306_v47 }
 0x146   :  { %v201_v48 = vpop.f32.mrf.mxu1 }
 0x14b   :  { %v329_v49 = vpop.eup %328 }
 0x14c   :  { %v207_v50 = vadd.f32 1.0, %v329_v49 }
 0x14e   :  { %330 = vrcp.f32 %v207_v50  ;;  %v219_v54 = vand.u32 2147483648, %v207_v50  ;;  %v217_v56 = vand.u32 2147483647, %v207_v50  ;;  %vm213_vm5 = vweird.f32 %v207_v50 }
 0x150   :  { %v220_v58 = vor.u32 1.1754944e-38, %v219_v54  ;;  %vm218_vm7 = vcmp.eq.f32.partialorder %v217_v56, 8.507059e+37 }
 0x154   :  { %v331_v51 = vpop.eup %330 }
 0x155   :  { %v209_v52 = vmul.f32 %v331_v51, %v207_v50  ;;  %vm214_vm4 = vweird.f32 %v331_v51 }
 0x156   :  { %vm215_vm6 = vmor %vm213_vm5, %vm214_vm4 }
 0x157   :  { %v210_v53 = vsub.f32 1.0, %v209_v52 }
 0x159   :  { %v211_v55 = vmul.f32 %v331_v51, %v210_v53 }
 0x15b   :  { %v212_v57 = vadd.f32 %v331_v51, %v211_v55 }
 0x15d   :  { %v216_v59 = vsel %vm215_vm6, %v331_v51, %v212_v57 }
 0x15e   :  { %v221_v60 = vsel %vm218_vm7, %v220_v58, %v216_v59 }
 0x15f   :  { %v223_v61 = vmul.f32 %v221_v60, %v203_v46 }
 0x161   :  { %224 = vst [vmem:[#allocation2] sm:$0xff] %v223_v61 }
 0x162   :  { %235 = dma.vmem_to_hbm [thread:$0]  %s231_s22, 128, %s233_s25, [#allocation3]  }
 0x163   :  { %356 = dma.done.wait [#allocation3], 128  }
 0x164   :  { %357 = vsyncadd [#allocation3], 4294967168 }
 0x165   :  { %240 = vsyncpa [#allocation3], 1 }

</bundles_post_ra>
